<compile_context>
chip_gen: v7x
topology: tpu7x:2x2x1
jax: 0.10.0
libtpu: 0.0.40
codegen_flags: <defaults>
</compile_context>

<pallas_src>
import math
from functools import partial

import numpy as np
import jax
import jax.numpy as jnp
from jax.experimental import pallas as pl
from jax.experimental.pallas import tpu as pltpu


LRELU_SLOPE = 0.2  # MDC.forward uses F.leaky_relu(x, 0.2) for branches and post_conv


def get_padding(kernel_size, dilation=1):
    return int((kernel_size * dilation - dilation) / 2)


def _pick_div_tile(n, candidates=(1024, 512, 256, 128)):
    """Largest lane tile that divides n (falls back to the full extent)."""
    for c in candidates:
        if n >= c and n % c == 0:
            return c
    return n


# ----------------------------------------------------------------------------
# Kernel A: fused multi-dilation branches
#   out = sum_i leaky_relu(conv1d(x, w_i, b_i, dilation=d_i, pad=get_padding(k_i,d_i)))
# ----------------------------------------------------------------------------
def _make_mdc_branch_kernel(branch_meta, cin, t_out, slope):
    # branch_meta: tuple of (k, dilation, tap_offset_base, tap_col_start)
    def kernel(x_ref, w_ref, b_ref, o_ref):
        acc_sum = None
        for i, (k, d, off0, col0) in enumerate(branch_meta):
            acc = jnp.zeros(o_ref.shape, jnp.float32)
            for j in range(k):                      # in-kernel im2col: static tap slices
                off = off0 + j * d
                c0 = (col0 + j) * cin
                acc = acc + jnp.dot(
                    w_ref[:, c0:c0 + cin],          # [co_tile, Cin]   (bf16)
                    x_ref[:, off:off + t_out],      # [Cin, T]         (bf16)
                    preferred_element_type=jnp.float32)
            acc = acc + b_ref[i]                    # [co_tile, 1] broadcast (f32)
            act = jnp.where(acc >= 0, acc, slope * acc)
            acc_sum = act if acc_sum is None else acc_sum + act
        o_ref[...] = acc_sum.astype(o_ref.dtype)
    return kernel


def mdc_branch_convs(x, branch_ws, branch_bs, kernel_sizes, dilations,
                     *, slope=LRELU_SLOPE):
    """x: [B, Cin, T], w_i: [Cout, Cin, k_i], b_i: [Cout]  ->  [B, Cout, T] (f32)."""
    B, Cin, T = x.shape
    Cout = branch_ws[0].shape[0]
    NB = len(branch_ws)
    pads = [get_padding(k, d) for k, d in zip(kernel_sizes, dilations)]
    P = max(pads)
    Tp = T + 2 * P
    for k, d, p in zip(kernel_sizes, dilations, pads):
        assert T + 2 * p - d * (k - 1) == T, "branch convs must be length-preserving"

    # pad once with the max padding; per-branch tap offsets absorb the difference
    x_pad = jnp.pad(x, ((0, 0), (0, 0), (P, P))).astype(jnp.bfloat16)

    # pack all branch weights into one [Cout, sum_i(k_i)*Cin] matrix (tap-major, cin)
    w_cols, col_starts, col = [], [], 0
    for w, k in zip(branch_ws, kernel_sizes):
        w_cols.append(jnp.transpose(w, (0, 2, 1)).reshape(Cout, k * Cin))
        col_starts.append(col)
        col += k
    w_packed = jnp.concatenate(w_cols, axis=1).astype(jnp.bfloat16)
    total_kc = w_packed.shape[1]
    b_packed = jnp.stack([b.reshape(Cout, 1) for b in branch_bs], axis=0)  # [NB,Cout,1] f32

    branch_meta = tuple(
        (int(k), int(d), int(P - p), int(c0))
        for k, d, p, c0 in zip(kernel_sizes, dilations, pads, col_starts))

    # output-channel tiling (only kicks in for large Cout); keeps weight resident
    co_tile = 256 if (Cout > 256 and Cout % 256 == 0) else Cout
    n_ct = Cout // co_tile

    out = pl.pallas_call(
        _make_mdc_branch_kernel(branch_meta, Cin, T, slope),
        out_shape=jax.ShapeDtypeStruct((B, Cout, T), jnp.float32),
        grid_spec=pltpu.PrefetchScalarGridSpec(
            num_scalar_prefetch=0,
            grid=(n_ct, B),   # batch innermost: weight/bias block index is constant
            in_specs=[
                pl.BlockSpec((None, Cin, Tp),     lambda ct, b: (b, 0, 0)),
                pl.BlockSpec((co_tile, total_kc), lambda ct, b: (ct, 0)),
                pl.BlockSpec((NB, co_tile, 1),    lambda ct, b: (0, ct, 0)),
            ],
            out_specs=pl.BlockSpec((None, co_tile, T), lambda ct, b: (b, ct, 0)),
        ),
        compiler_params=pltpu.CompilerParams(
            dimension_semantics=("parallel", "parallel"),
            vmem_limit_bytes=32 * 1024 * 1024),
    )(x_pad, w_packed, b_packed)
    return out


# ----------------------------------------------------------------------------
# Kernel B: post_conv (Conv1d k=3, stride=s) + leaky_relu, batch folded into lanes
# ----------------------------------------------------------------------------
def _make_post_conv_kernel(slope):
    def kernel(x_ref, w_ref, b_ref, o_ref):
        y = jnp.dot(w_ref[...], x_ref[...], preferred_element_type=jnp.float32)
        y = y + b_ref[...]
        y = jnp.where(y >= 0, y, slope * y)
        o_ref[...] = y.astype(o_ref.dtype)
    return kernel


def mdc_post_conv(x, w, b, *, stride, padding, slope=LRELU_SLOPE):
    """x: [B, Cin, T], w: [Cout, Cin, K], b: [Cout]  ->  [B, Cout, T_out] (f32)."""
    B, Cin, T = x.shape
    Cout, Cin_w, K = w.shape
    assert Cin_w == Cin
    T_out = (T + 2 * padding - (K - 1) - 1) // stride + 1
    assert T_out >= 1

    x_pad = jnp.pad(x, ((0, 0), (0, 0), (padding, padding)))
    # small (K=3) strided im2col in the wrapper, then fold batch into the lane axis
    taps = [jax.lax.slice_in_dim(x_pad, j, j + stride * (T_out - 1) + 1,
                                 stride=stride, axis=2) for j in range(K)]
    xt = jnp.concatenate(taps, axis=1)                                   # [B, K*Cin, T_out]
    xt = jnp.transpose(xt, (1, 0, 2)).reshape(K * Cin, B * T_out)        # lane-dense
    xt = xt.astype(jnp.bfloat16)

    wt = jnp.transpose(w, (0, 2, 1)).reshape(Cout, K * Cin).astype(jnp.bfloat16)
    bt = b.reshape(Cout, 1).astype(jnp.float32)

    L = B * T_out
    lane_tile = _pick_div_tile(L)
    n_lt = L // lane_tile
    co_tile = 256 if (Cout > 256 and Cout % 256 == 0) else Cout
    n_ct = Cout // co_tile

    out = pl.pallas_call(
        _make_post_conv_kernel(slope),
        out_shape=jax.ShapeDtypeStruct((Cout, L), jnp.float32),
        grid_spec=pltpu.PrefetchScalarGridSpec(
            num_scalar_prefetch=0,
            grid=(n_ct, n_lt),   # lane tiles innermost: weight block stays resident
            in_specs=[
                pl.BlockSpec((K * Cin, lane_tile), lambda ct, lt: (0, lt)),
                pl.BlockSpec((co_tile, K * Cin),   lambda ct, lt: (ct, 0)),
                pl.BlockSpec((co_tile, 1),         lambda ct, lt: (ct, 0)),
            ],
            out_specs=pl.BlockSpec((co_tile, lane_tile), lambda ct, lt: (ct, lt)),
        ),
        compiler_params=pltpu.CompilerParams(
            dimension_semantics=("parallel", "parallel"),
            vmem_limit_bytes=32 * 1024 * 1024),
    )(xt, wt, bt)
    return jnp.transpose(out.reshape(Cout, B, T_out), (1, 0, 2))


# ----------------------------------------------------------------------------
# MDC module: params + forward
# ----------------------------------------------------------------------------
def init_mdc_params(key, in_channels, out_channels, strides, kernel_size, dilations):
    d_w, d_b = [], []
    for k in kernel_size:
        key, wk, bk = jax.random.split(key, 3)
        fan_in = in_channels * k
        d_w.append(jax.random.normal(wk, (out_channels, in_channels, k),
                                     jnp.float32) / math.sqrt(fan_in))
        d_b.append(0.01 * jax.random.normal(bk, (out_channels,), jnp.float32))
    key, wk, bk = jax.random.split(key, 3)
    post_w = jax.random.normal(wk, (out_channels, out_channels, 3),
                               jnp.float32) / math.sqrt(out_channels * 3)
    post_b = 0.01 * jax.random.normal(bk, (out_channels,), jnp.float32)
    # NOTE: the reference module computes the post_conv padding from the *last*
    # (_k, _d) leftover from the branch loop -- replicate that quirk exactly.
    post_padding = get_padding(kernel_size[-1], dilations[-1])
    return dict(d_w=d_w, d_b=d_b, post_w=post_w, post_b=post_b,
                strides=int(strides), post_padding=int(post_padding),
                kernel_size=tuple(kernel_size), dilations=tuple(dilations))


def mdc_forward(params, x):
    """MDC.forward:
         out = sum_i leaky_relu(d_conv_i(x), 0.2)
         out = leaky_relu(post_conv(out), 0.2)
    """
    y = mdc_branch_convs(x, params["d_w"], params["d_b"],
                         params["kernel_size"], params["dilations"])
    y = mdc_post_conv(y, params["post_w"], params["post_b"],
                      stride=params["strides"], padding=params["post_padding"])
    return y


# ----------------------------------------------------------------------------
# Pure-JAX reference (with matching bf16 input quantization) for validation
# ----------------------------------------------------------------------------
def _conv1d_ref(x, w, b, stride=1, padding=0, dilation=1):
    y = jax.lax.conv_general_dilated(
        x, w, window_strides=(stride,), padding=[(padding, padding)],
        rhs_dilation=(dilation,), dimension_numbers=("NCH", "OIH", "NCH"))
    return y + b[None, :, None]


def mdc_forward_ref(params, x):
    q = lambda a: a.astype(jnp.bfloat16).astype(jnp.float32)
    xq = q(x)
    acc = None
    for w, bb, k, d in zip(params["d_w"], params["d_b"],
                           params["kernel_size"], params["dilations"]):
        y = _conv1d_ref(xq, q(w), bb, stride=1, padding=get_padding(k, d), dilation=d)
        y = jnp.where(y >= 0, y, LRELU_SLOPE * y)
        acc = y if acc is None else acc + y
    y = _conv1d_ref(q(acc), q(params["post_w"]), params["post_b"],
                    stride=params["strides"], padding=params["post_padding"])
    return jnp.where(y >= 0, y, LRELU_SLOPE * y)


# ----------------------------------------------------------------------------
if __name__ == "__main__":
    key = jax.random.PRNGKey(0)
    in_channels, out_channels = 4, 32
    kernel_size = (3, 5, 7)
    dilations = (1, 2, 3)
    strides = 2
    B, T = 2, 64

    key, pkey, xkey = jax.random.split(key, 3)
    params = init_mdc_params(pkey, in_channels, out_channels, strides,
                             kernel_size, dilations)
    x = 0.5 * jax.random.normal(xkey, (B, in_channels, T), jnp.float32)

    fwd = jax.jit(lambda xx: mdc_forward(params, xx))
    y = jax.block_until_ready(fwd(x))

    y_ref = jax.block_until_ready(mdc_forward_ref(params, x))
    if not np.allclose(np.asarray(y), np.asarray(y_ref), atol=5e-3, rtol=5e-3):
        raise SystemExit("MISMATCH max_abs_err=%.3e"
                         % float(jnp.max(jnp.abs(y - y_ref))))
    print("KERNEL_OK")
</pallas_src>

<mosaic_0001>
module attributes {stable_mosaic.version = 11 : i64} {
  func.func @kernel(%arg0: i32, %arg1: i32, %arg2: memref<1x4x82xbf16, #tpu.memory_space<vmem>>, %arg3: memref<32x60xbf16, #tpu.memory_space<vmem>>, %arg4: memref<3x32x1xf32, #tpu.memory_space<vmem>>, %arg5: memref<1x32x64xf32, #tpu.memory_space<vmem>>) attributes {dimension_semantics = [#tpu.dimension_semantics<parallel>, #tpu.dimension_semantics<parallel>], iteration_bounds = array<i64: 1, 2>, scalar_prefetch = 0 : i64, scratch_operands = 0 : i64, tpu.core_type = #tpu.core_type<tc>, window_params = [{transform_indices = @transform_0, window_bounds = array<i64: 1, 4, 82>}, {transform_indices = @transform_1, window_bounds = array<i64: 32, 60>}, {transform_indices = @transform_2, window_bounds = array<i64: 3, 32, 1>}, {transform_indices = @transform_3, window_bounds = array<i64: 1, 32, 64>}]} {
    %cst = arith.constant 0.000000e+00 : f32
    %0 = vector.broadcast %cst : f32 to vector<32x64xf32>
    %c0 = arith.constant 0 : index
    %c0_0 = arith.constant 0 : index
    %1 = vector.load %arg3[%c0, %c0_0] : memref<32x60xbf16, #tpu.memory_space<vmem>>, vector<32x4xbf16>
    %c0_1 = arith.constant 0 : index
    %c0_2 = arith.constant 0 : index
    %c8 = arith.constant 8 : index
    %2 = vector.load %arg2[%c0_1, %c0_2, %c8] : memref<1x4x82xbf16, #tpu.memory_space<vmem>>, vector<1x4x64xbf16>
    %3 = vector.shape_cast %2 : vector<1x4x64xbf16> to vector<4x64xbf16>
    %cst_3 = arith.constant dense<0.000000e+00> : vector<32x64xf32>
    %4 = tpu.matmul %1, %3, %cst_3 {dimension_numbers = #tpu.dot_dimension_numbers<[1], [0], [0], [1], [0, 0, 1, 1], [], []>} : vector<32x4xbf16>, vector<4x64xbf16>, vector<32x64xf32> -> vector<32x64xf32>
    %5 = arith.addf %0, %4 : vector<32x64xf32>
    %c0_4 = arith.constant 0 : index
    %c4 = arith.constant 4 : index
    %6 = vector.load %arg3[%c0_4, %c4] : memref<32x60xbf16, #tpu.memory_space<vmem>>, vector<32x4xbf16>
    %c0_5 = arith.constant 0 : index
    %c0_6 = arith.constant 0 : index
    %c9 = arith.constant 9 : index
    %7 = vector.load %arg2[%c0_5, %c0_6, %c9] : memref<1x4x82xbf16, #tpu.memory_space<vmem>>, vector<1x4x64xbf16>
    %8 = vector.shape_cast %7 : vector<1x4x64xbf16> to vector<4x64xbf16>
    %cst_7 = arith.constant dense<0.000000e+00> : vector<32x64xf32>
    %9 = tpu.matmul %6, %8, %cst_7 {dimension_numbers = #tpu.dot_dimension_numbers<[1], [0], [0], [1], [0, 0, 1, 1], [], []>} : vector<32x4xbf16>, vector<4x64xbf16>, vector<32x64xf32> -> vector<32x64xf32>
    %10 = arith.addf %5, %9 : vector<32x64xf32>
    %c0_8 = arith.constant 0 : index
    %c8_9 = arith.constant 8 : index
    %11 = vector.load %arg3[%c0_8, %c8_9] : memref<32x60xbf16, #tpu.memory_space<vmem>>, vector<32x4xbf16>
    %c0_10 = arith.constant 0 : index
    %c0_11 = arith.constant 0 : index
    %c10 = arith.constant 10 : index
    %12 = vector.load %arg2[%c0_10, %c0_11, %c10] : memref<1x4x82xbf16, #tpu.memory_space<vmem>>, vector<1x4x64xbf16>
    %13 = vector.shape_cast %12 : vector<1x4x64xbf16> to vector<4x64xbf16>
    %cst_12 = arith.constant dense<0.000000e+00> : vector<32x64xf32>
    %14 = tpu.matmul %11, %13, %cst_12 {dimension_numbers = #tpu.dot_dimension_numbers<[1], [0], [0], [1], [0, 0, 1, 1], [], []>} : vector<32x4xbf16>, vector<4x64xbf16>, vector<32x64xf32> -> vector<32x64xf32>
    %15 = arith.addf %10, %14 : vector<32x64xf32>
    %c0_13 = arith.constant 0 : index
    %c0_14 = arith.constant 0 : index
    %c0_15 = arith.constant 0 : index
    %16 = vector.load %arg4[%c0_13, %c0_14, %c0_15] : memref<3x32x1xf32, #tpu.memory_space<vmem>>, vector<1x32x1xf32>
    %17 = vector.shape_cast %16 : vector<1x32x1xf32> to vector<32x1xf32>
    %18 = vector.broadcast %17 : vector<32x1xf32> to vector<32x64xf32>
    %19 = arith.addf %15, %18 : vector<32x64xf32>
    %cst_16 = arith.constant 0.000000e+00 : f32
    %20 = vector.broadcast %cst_16 : f32 to vector<32x64xf32>
    %21 = arith.cmpf oge, %19, %20 : vector<32x64xf32>
    %cst_17 = arith.constant 2.000000e-01 : f32
    %22 = vector.broadcast %cst_17 : f32 to vector<32x64xf32>
    %23 = arith.mulf %22, %19 : vector<32x64xf32>
    %24 = arith.select %21, %19, %23 : vector<32x64xi1>, vector<32x64xf32>
    %cst_18 = arith.constant 0.000000e+00 : f32
    %25 = vector.broadcast %cst_18 : f32 to vector<32x64xf32>
    %c0_19 = arith.constant 0 : index
    %c12 = arith.constant 12 : index
    %26 = vector.load %arg3[%c0_19, %c12] : memref<32x60xbf16, #tpu.memory_space<vmem>>, vector<32x4xbf16>
    %c0_20 = arith.constant 0 : index
    %c0_21 = arith.constant 0 : index
    %c5 = arith.constant 5 : index
    %27 = vector.load %arg2[%c0_20, %c0_21, %c5] : memref<1x4x82xbf16, #tpu.memory_space<vmem>>, vector<1x4x64xbf16>
    %28 = vector.shape_cast %27 : vector<1x4x64xbf16> to vector<4x64xbf16>
    %cst_22 = arith.constant dense<0.000000e+00> : vector<32x64xf32>
    %29 = tpu.matmul %26, %28, %cst_22 {dimension_numbers = #tpu.dot_dimension_numbers<[1], [0], [0], [1], [0, 0, 1, 1], [], []>} : vector<32x4xbf16>, vector<4x64xbf16>, vector<32x64xf32> -> vector<32x64xf32>
    %30 = arith.addf %25, %29 : vector<32x64xf32>
    %c0_23 = arith.constant 0 : index
    %c16 = arith.constant 16 : index
    %31 = vector.load %arg3[%c0_23, %c16] : memref<32x60xbf16, #tpu.memory_space<vmem>>, vector<32x4xbf16>
    %c0_24 = arith.constant 0 : index
    %c0_25 = arith.constant 0 : index
    %c7 = arith.constant 7 : index
    %32 = vector.load %arg2[%c0_24, %c0_25, %c7] : memref<1x4x82xbf16, #tpu.memory_space<vmem>>, vector<1x4x64xbf16>
    %33 = vector.shape_cast %32 : vector<1x4x64xbf16> to vector<4x64xbf16>
    %cst_26 = arith.constant dense<0.000000e+00> : vector<32x64xf32>
    %34 = tpu.matmul %31, %33, %cst_26 {dimension_numbers = #tpu.dot_dimension_numbers<[1], [0], [0], [1], [0, 0, 1, 1], [], []>} : vector<32x4xbf16>, vector<4x64xbf16>, vector<32x64xf32> -> vector<32x64xf32>
    %35 = arith.addf %30, %34 : vector<32x64xf32>
    %c0_27 = arith.constant 0 : index
    %c20 = arith.constant 20 : index
    %36 = vector.load %arg3[%c0_27, %c20] : memref<32x60xbf16, #tpu.memory_space<vmem>>, vector<32x4xbf16>
    %c0_28 = arith.constant 0 : index
    %c0_29 = arith.constant 0 : index
    %c9_30 = arith.constant 9 : index
    %37 = vector.load %arg2[%c0_28, %c0_29, %c9_30] : memref<1x4x82xbf16, #tpu.memory_space<vmem>>, vector<1x4x64xbf16>
    %38 = vector.shape_cast %37 : vector<1x4x64xbf16> to vector<4x64xbf16>
    %cst_31 = arith.constant dense<0.000000e+00> : vector<32x64xf32>
    %39 = tpu.matmul %36, %38, %cst_31 {dimension_numbers = #tpu.dot_dimension_numbers<[1], [0], [0], [1], [0, 0, 1, 1], [], []>} : vector<32x4xbf16>, vector<4x64xbf16>, vector<32x64xf32> -> vector<32x64xf32>
    %40 = arith.addf %35, %39 : vector<32x64xf32>
    %c0_32 = arith.constant 0 : index
    %c24 = arith.constant 24 : index
    %41 = vector.load %arg3[%c0_32, %c24] : memref<32x60xbf16, #tpu.memory_space<vmem>>, vector<32x4xbf16>
    %c0_33 = arith.constant 0 : index
    %c0_34 = arith.constant 0 : index
    %c11 = arith.constant 11 : index
    %42 = vector.load %arg2[%c0_33, %c0_34, %c11] : memref<1x4x82xbf16, #tpu.memory_space<vmem>>, vector<1x4x64xbf16>
    %43 = vector.shape_cast %42 : vector<1x4x64xbf16> to vector<4x64xbf16>
    %cst_35 = arith.constant dense<0.000000e+00> : vector<32x64xf32>
    %44 = tpu.matmul %41, %43, %cst_35 {dimension_numbers = #tpu.dot_dimension_numbers<[1], [0], [0], [1], [0, 0, 1, 1], [], []>} : vector<32x4xbf16>, vector<4x64xbf16>, vector<32x64xf32> -> vector<32x64xf32>
    %45 = arith.addf %40, %44 : vector<32x64xf32>
    %c0_36 = arith.constant 0 : index
    %c28 = arith.constant 28 : index
    %46 = vector.load %arg3[%c0_36, %c28] : memref<32x60xbf16, #tpu.memory_space<vmem>>, vector<32x4xbf16>
    %c0_37 = arith.constant 0 : index
    %c0_38 = arith.constant 0 : index
    %c13 = arith.constant 13 : index
    %47 = vector.load %arg2[%c0_37, %c0_38, %c13] : memref<1x4x82xbf16, #tpu.memory_space<vmem>>, vector<1x4x64xbf16>
    %48 = vector.shape_cast %47 : vector<1x4x64xbf16> to vector<4x64xbf16>
    %cst_39 = arith.constant dense<0.000000e+00> : vector<32x64xf32>
    %49 = tpu.matmul %46, %48, %cst_39 {dimension_numbers = #tpu.dot_dimension_numbers<[1], [0], [0], [1], [0, 0, 1, 1], [], []>} : vector<32x4xbf16>, vector<4x64xbf16>, vector<32x64xf32> -> vector<32x64xf32>
    %50 = arith.addf %45, %49 : vector<32x64xf32>
    %c1 = arith.constant 1 : index
    %c0_40 = arith.constant 0 : index
    %c0_41 = arith.constant 0 : index
    %51 = vector.load %arg4[%c1, %c0_40, %c0_41] : memref<3x32x1xf32, #tpu.memory_space<vmem>>, vector<1x32x1xf32>
    %52 = vector.shape_cast %51 : vector<1x32x1xf32> to vector<32x1xf32>
    %53 = vector.broadcast %52 : vector<32x1xf32> to vector<32x64xf32>
    %54 = arith.addf %50, %53 : vector<32x64xf32>
    %cst_42 = arith.constant 0.000000e+00 : f32
    %55 = vector.broadcast %cst_42 : f32 to vector<32x64xf32>
    %56 = arith.cmpf oge, %54, %55 : vector<32x64xf32>
    %cst_43 = arith.constant 2.000000e-01 : f32
    %57 = vector.broadcast %cst_43 : f32 to vector<32x64xf32>
    %58 = arith.mulf %57, %54 : vector<32x64xf32>
    %59 = arith.select %56, %54, %58 : vector<32x64xi1>, vector<32x64xf32>
    %60 = arith.addf %24, %59 : vector<32x64xf32>
    %cst_44 = arith.constant 0.000000e+00 : f32
    %61 = vector.broadcast %cst_44 : f32 to vector<32x64xf32>
    %c0_45 = arith.constant 0 : index
    %c32 = arith.constant 32 : index
    %62 = vector.load %arg3[%c0_45, %c32] : memref<32x60xbf16, #tpu.memory_space<vmem>>, vector<32x4xbf16>
    %c0_46 = arith.constant 0 : index
    %c0_47 = arith.constant 0 : index
    %c0_48 = arith.constant 0 : index
    %63 = vector.load %arg2[%c0_46, %c0_47, %c0_48] : memref<1x4x82xbf16, #tpu.memory_space<vmem>>, vector<1x4x64xbf16>
    %64 = vector.shape_cast %63 : vector<1x4x64xbf16> to vector<4x64xbf16>
    %cst_49 = arith.constant dense<0.000000e+00> : vector<32x64xf32>
    %65 = tpu.matmul %62, %64, %cst_49 {dimension_numbers = #tpu.dot_dimension_numbers<[1], [0], [0], [1], [0, 0, 1, 1], [], []>} : vector<32x4xbf16>, vector<4x64xbf16>, vector<32x64xf32> -> vector<32x64xf32>
    %66 = arith.addf %61, %65 : vector<32x64xf32>
    %c0_50 = arith.constant 0 : index
    %c36 = arith.constant 36 : index
    %67 = vector.load %arg3[%c0_50, %c36] : memref<32x60xbf16, #tpu.memory_space<vmem>>, vector<32x4xbf16>
    %c0_51 = arith.constant 0 : index
    %c0_52 = arith.constant 0 : index
    %c3 = arith.constant 3 : index
    %68 = vector.load %arg2[%c0_51, %c0_52, %c3] : memref<1x4x82xbf16, #tpu.memory_space<vmem>>, vector<1x4x64xbf16>
    %69 = vector.shape_cast %68 : vector<1x4x64xbf16> to vector<4x64xbf16>
    %cst_53 = arith.constant dense<0.000000e+00> : vector<32x64xf32>
    %70 = tpu.matmul %67, %69, %cst_53 {dimension_numbers = #tpu.dot_dimension_numbers<[1], [0], [0], [1], [0, 0, 1, 1], [], []>} : vector<32x4xbf16>, vector<4x64xbf16>, vector<32x64xf32> -> vector<32x64xf32>
    %71 = arith.addf %66, %70 : vector<32x64xf32>
    %c0_54 = arith.constant 0 : index
    %c40 = arith.constant 40 : index
    %72 = vector.load %arg3[%c0_54, %c40] : memref<32x60xbf16, #tpu.memory_space<vmem>>, vector<32x4xbf16>
    %c0_55 = arith.constant 0 : index
    %c0_56 = arith.constant 0 : index
    %c6 = arith.constant 6 : index
    %73 = vector.load %arg2[%c0_55, %c0_56, %c6] : memref<1x4x82xbf16, #tpu.memory_space<vmem>>, vector<1x4x64xbf16>
    %74 = vector.shape_cast %73 : vector<1x4x64xbf16> to vector<4x64xbf16>
    %cst_57 = arith.constant dense<0.000000e+00> : vector<32x64xf32>
    %75 = tpu.matmul %72, %74, %cst_57 {dimension_numbers = #tpu.dot_dimension_numbers<[1], [0], [0], [1], [0, 0, 1, 1], [], []>} : vector<32x4xbf16>, vector<4x64xbf16>, vector<32x64xf32> -> vector<32x64xf32>
    %76 = arith.addf %71, %75 : vector<32x64xf32>
    %c0_58 = arith.constant 0 : index
    %c44 = arith.constant 44 : index
    %77 = vector.load %arg3[%c0_58, %c44] : memref<32x60xbf16, #tpu.memory_space<vmem>>, vector<32x4xbf16>
    %c0_59 = arith.constant 0 : index
    %c0_60 = arith.constant 0 : index
    %c9_61 = arith.constant 9 : index
    %78 = vector.load %arg2[%c0_59, %c0_60, %c9_61] : memref<1x4x82xbf16, #tpu.memory_space<vmem>>, vector<1x4x64xbf16>
    %79 = vector.shape_cast %78 : vector<1x4x64xbf16> to vector<4x64xbf16>
    %cst_62 = arith.constant dense<0.000000e+00> : vector<32x64xf32>
    %80 = tpu.matmul %77, %79, %cst_62 {dimension_numbers = #tpu.dot_dimension_numbers<[1], [0], [0], [1], [0, 0, 1, 1], [], []>} : vector<32x4xbf16>, vector<4x64xbf16>, vector<32x64xf32> -> vector<32x64xf32>
    %81 = arith.addf %76, %80 : vector<32x64xf32>
    %c0_63 = arith.constant 0 : index
    %c48 = arith.constant 48 : index
    %82 = vector.load %arg3[%c0_63, %c48] : memref<32x60xbf16, #tpu.memory_space<vmem>>, vector<32x4xbf16>
    %c0_64 = arith.constant 0 : index
    %c0_65 = arith.constant 0 : index
    %c12_66 = arith.constant 12 : index
    %83 = vector.load %arg2[%c0_64, %c0_65, %c12_66] : memref<1x4x82xbf16, #tpu.memory_space<vmem>>, vector<1x4x64xbf16>
    %84 = vector.shape_cast %83 : vector<1x4x64xbf16> to vector<4x64xbf16>
    %cst_67 = arith.constant dense<0.000000e+00> : vector<32x64xf32>
    %85 = tpu.matmul %82, %84, %cst_67 {dimension_numbers = #tpu.dot_dimension_numbers<[1], [0], [0], [1], [0, 0, 1, 1], [], []>} : vector<32x4xbf16>, vector<4x64xbf16>, vector<32x64xf32> -> vector<32x64xf32>
    %86 = arith.addf %81, %85 : vector<32x64xf32>
    %c0_68 = arith.constant 0 : index
    %c52 = arith.constant 52 : index
    %87 = vector.load %arg3[%c0_68, %c52] : memref<32x60xbf16, #tpu.memory_space<vmem>>, vector<32x4xbf16>
    %c0_69 = arith.constant 0 : index
    %c0_70 = arith.constant 0 : index
    %c15 = arith.constant 15 : index
    %88 = vector.load %arg2[%c0_69, %c0_70, %c15] : memref<1x4x82xbf16, #tpu.memory_space<vmem>>, vector<1x4x64xbf16>
    %89 = vector.shape_cast %88 : vector<1x4x64xbf16> to vector<4x64xbf16>
    %cst_71 = arith.constant dense<0.000000e+00> : vector<32x64xf32>
    %90 = tpu.matmul %87, %89, %cst_71 {dimension_numbers = #tpu.dot_dimension_numbers<[1], [0], [0], [1], [0, 0, 1, 1], [], []>} : vector<32x4xbf16>, vector<4x64xbf16>, vector<32x64xf32> -> vector<32x64xf32>
    %91 = arith.addf %86, %90 : vector<32x64xf32>
    %c0_72 = arith.constant 0 : index
    %c56 = arith.constant 56 : index
    %92 = vector.load %arg3[%c0_72, %c56] : memref<32x60xbf16, #tpu.memory_space<vmem>>, vector<32x4xbf16>
    %c0_73 = arith.constant 0 : index
    %c0_74 = arith.constant 0 : index
    %c18 = arith.constant 18 : index
    %93 = vector.load %arg2[%c0_73, %c0_74, %c18] : memref<1x4x82xbf16, #tpu.memory_space<vmem>>, vector<1x4x64xbf16>
    %94 = vector.shape_cast %93 : vector<1x4x64xbf16> to vector<4x64xbf16>
    %cst_75 = arith.constant dense<0.000000e+00> : vector<32x64xf32>
    %95 = tpu.matmul %92, %94, %cst_75 {dimension_numbers = #tpu.dot_dimension_numbers<[1], [0], [0], [1], [0, 0, 1, 1], [], []>} : vector<32x4xbf16>, vector<4x64xbf16>, vector<32x64xf32> -> vector<32x64xf32>
    %96 = arith.addf %91, %95 : vector<32x64xf32>
    %c2 = arith.constant 2 : index
    %c0_76 = arith.constant 0 : index
    %c0_77 = arith.constant 0 : index
    %97 = vector.load %arg4[%c2, %c0_76, %c0_77] : memref<3x32x1xf32, #tpu.memory_space<vmem>>, vector<1x32x1xf32>
    %98 = vector.shape_cast %97 : vector<1x32x1xf32> to vector<32x1xf32>
    %99 = vector.broadcast %98 : vector<32x1xf32> to vector<32x64xf32>
    %100 = arith.addf %96, %99 : vector<32x64xf32>
    %cst_78 = arith.constant 0.000000e+00 : f32
    %101 = vector.broadcast %cst_78 : f32 to vector<32x64xf32>
    %102 = arith.cmpf oge, %100, %101 : vector<32x64xf32>
    %cst_79 = arith.constant 2.000000e-01 : f32
    %103 = vector.broadcast %cst_79 : f32 to vector<32x64xf32>
    %104 = arith.mulf %103, %100 : vector<32x64xf32>
    %105 = arith.select %102, %100, %104 : vector<32x64xi1>, vector<32x64xf32>
    %106 = arith.addf %60, %105 : vector<32x64xf32>
    %c0_80 = arith.constant 0 : index
    %c0_81 = arith.constant 0 : index
    %c0_82 = arith.constant 0 : index
    %107 = vector.load %arg5[%c0_80, %c0_81, %c0_82] : memref<1x32x64xf32, #tpu.memory_space<vmem>>, vector<1x32x64xf32>
    %108 = vector.shape_cast %107 : vector<1x32x64xf32> to vector<32x64xf32>
    %109 = vector.shape_cast %106 : vector<32x64xf32> to vector<1x32x64xf32>
    tpu.vector_store %arg5[%c0_80, %c0_81, %c0_82], %109 {strides = array<i32>} : memref<1x32x64xf32, #tpu.memory_space<vmem>>, vector<1x32x64xf32>,
    return
  }
  func.func @transform_0(%arg0: i32, %arg1: i32) -> (i32, i32, i32) {
    %c0_i32 = arith.constant 0 : i32
    %c0_i32_0 = arith.constant 0 : i32
    %c0_i32_1 = arith.constant 0 : i32
    return %arg1, %c0_i32, %c0_i32_0 : i32, i32, i32
  }
  func.func @transform_1(%arg0: i32, %arg1: i32) -> (i32, i32) {
    %c0_i32 = arith.constant 0 : i32
    %c0_i32_0 = arith.constant 0 : i32
    return %arg0, %c0_i32 : i32, i32
  }
  func.func @transform_2(%arg0: i32, %arg1: i32) -> (i32, i32, i32) {
    %c0_i32 = arith.constant 0 : i32
    %c0_i32_0 = arith.constant 0 : i32
    %c0_i32_1 = arith.constant 0 : i32
    return %c0_i32, %arg0, %c0_i32_0 : i32, i32, i32
  }
  func.func @transform_3(%arg0: i32, %arg1: i32) -> (i32, i32, i32) {
    %c0_i32 = arith.constant 0 : i32
    %c0_i32_0 = arith.constant 0 : i32
    return %arg1, %arg0, %c0_i32 : i32, i32, i32
  }
}

module attributes {stable_mosaic.version = 11 : i64} {
  func.func @kernel(%arg0: i32, %arg1: i32, %arg2: memref<96x80xbf16, #tpu.memory_space<vmem>>, %arg3: memref<32x96xbf16, #tpu.memory_space<vmem>>, %arg4: memref<32x1xf32, #tpu.memory_space<vmem>>, %arg5: memref<32x80xf32, #tpu.memory_space<vmem>>) attributes {dimension_semantics = [#tpu.dimension_semantics<parallel>, #tpu.dimension_semantics<parallel>], iteration_bounds = array<i64: 1, 1>, scalar_prefetch = 0 : i64, scratch_operands = 0 : i64, tpu.core_type = #tpu.core_type<tc>, window_params = [{transform_indices = @transform_0, window_bounds = array<i64: 96, 80>}, {transform_indices = @transform_1, window_bounds = array<i64: 32, 96>}, {transform_indices = @transform_2, window_bounds = array<i64: 32, 1>}, {transform_indices = @transform_3, window_bounds = array<i64: 32, 80>}]} {
    %c0 = arith.constant 0 : index
    %c0_0 = arith.constant 0 : index
    %0 = vector.load %arg3[%c0, %c0_0] : memref<32x96xbf16, #tpu.memory_space<vmem>>, vector<32x96xbf16>
    %c0_1 = arith.constant 0 : index
    %c0_2 = arith.constant 0 : index
    %1 = vector.load %arg2[%c0_1, %c0_2] : memref<96x80xbf16, #tpu.memory_space<vmem>>, vector<96x80xbf16>
    %cst = arith.constant dense<0.000000e+00> : vector<32x80xf32>
    %2 = tpu.matmul %0, %1, %cst {dimension_numbers = #tpu.dot_dimension_numbers<[1], [0], [0], [1], [0, 0, 1, 1], [], []>} : vector<32x96xbf16>, vector<96x80xbf16>, vector<32x80xf32> -> vector<32x80xf32>
    %c0_3 = arith.constant 0 : index
    %c0_4 = arith.constant 0 : index
    %3 = vector.load %arg4[%c0_3, %c0_4] : memref<32x1xf32, #tpu.memory_space<vmem>>, vector<32x1xf32>
    %4 = vector.broadcast %3 : vector<32x1xf32> to vector<32x80xf32>
    %5 = arith.addf %2, %4 : vector<32x80xf32>
    %cst_5 = arith.constant 0.000000e+00 : f32
    %6 = vector.broadcast %cst_5 : f32 to vector<32x80xf32>
    %7 = arith.cmpf oge, %5, %6 : vector<32x80xf32>
    %cst_6 = arith.constant 2.000000e-01 : f32
    %8 = vector.broadcast %cst_6 : f32 to vector<32x80xf32>
    %9 = arith.mulf %8, %5 : vector<32x80xf32>
    %10 = arith.select %7, %5, %9 : vector<32x80xi1>, vector<32x80xf32>
    %c0_7 = arith.constant 0 : index
    %c0_8 = arith.constant 0 : index
    %11 = vector.load %arg5[%c0_7, %c0_8] : memref<32x80xf32, #tpu.memory_space<vmem>>, vector<32x80xf32>
    tpu.vector_store %arg5[%c0_7, %c0_8], %10 {strides = array<i32>} : memref<32x80xf32, #tpu.memory_space<vmem>>, vector<32x80xf32>,
    return
  }
  func.func @transform_0(%arg0: i32, %arg1: i32) -> (i32, i32) {
    %c0_i32 = arith.constant 0 : i32
    %c0_i32_0 = arith.constant 0 : i32
    return %c0_i32, %arg1 : i32, i32
  }
  func.func @transform_1(%arg0: i32, %arg1: i32) -> (i32, i32) {
    %c0_i32 = arith.constant 0 : i32
    %c0_i32_0 = arith.constant 0 : i32
    return %arg0, %c0_i32 : i32, i32
  }
  func.func @transform_2(%arg0: i32, %arg1: i32) -> (i32, i32) {
    %c0_i32 = arith.constant 0 : i32
    %c0_i32_0 = arith.constant 0 : i32
    return %arg0, %c0_i32 : i32, i32
  }
  func.func @transform_3(%arg0: i32, %arg1: i32) -> (i32, i32) {
    %c0_i32 = arith.constant 0 : i32
    return %arg0, %arg1 : i32, i32
  }
}

</mosaic_0001>

<bundles_post_ra>
// kernel: _lambda_.2
= control target key start
LH: loop header
LB: loop body
LE: loop exit
PB: predicated region body
PF: predicated region fallthrough
CT: control target
= control target key end

     0   :  { %8 = vsyncpa [#allocation3], 0  ;;  %s2192_s12 = smov 0   ;;  %s2194_s13 = smov 0   ;;  %s2433_s0 = inlined_call_operand.vmem [shape: bf16[2,4,82], index: 0, kind: input, shape index: {}]   ;;  %s2434_s1 = inlined_call_operand.vmem [shape: bf16[32,60], index: 1, kind: input, shape index: {}]   ;;  %s2435_s2 = inlined_call_operand.hbm [shape: f32[3,32,1], index: 2, kind: input, shape index: {}]   ;;  %s2436_s3 = inlined_call_operand.vmem [shape: f32[2,32,64], index: 3, kind: output, shape index: {}]  }
   0x1   :  { %s2196_s14 = smov 0  }
   0x2 LB: > { %s1723_s15 = sadd.s32 4294967295, %s2141_s14   ;;  %s23_s16 = sadd.s32 1, %s2137_s13  ;;  %s2141_s14 = sphi %s2196_s14, %s14_s14   ;;  %s2137_s13 = sphi %s2194_s13, %s2446_s13   ;;  %s2133_s12 = sphi %s2192_s12, %s2445_s12  }
   0x3   : > { %p24_p0 = scmp.ge.s32.totalorder %s23_s16, 2  ;;  %p1725_p1 = scmp.ge.s32.totalorder %s2141_s14, 1 }
   0x4   : > { %p137_p2 = scmp.lt.s32.totalorder %s2141_s14, 3  ;;  %p2217_p4 = scmp.eq.s32.totalorder %s1723_s15, 0 }
   0x5   : > { %s2448_s16 = smov (%p24_p0, %s23_s16), 0  ;;  %s2143_s19 = smov [#allocation2]  }
   0x6   : > { %p2213_p3 = pnand %p1725_p1, %p137_p2  ;;  %s161_s20 = sshll.u32 %s2143_s19, 4  ;;  %s162_s20 = int_to_ptr.vmem [resolvable:$true] %s161_s20 }
   0x7   : > { %s2441_s18 = scalar_select %p2217_p4, 1, 0 }
   0x8   : > { %s2440_s17 = scalar_select %p2213_p3, 1, 0 }
   0x9   : > { %p2002_p5 = pneg %p2213_p3  ;;  %s2087_s24 = scalar_lea.hbm %s2435_s2, 1536 }
   0xa   : > { %p2088_p7 = scmp.ne.s32.totalorder %s2435_s2, %s2087_s24  ;;  %p2094_p11 = scmp.lt.u32.totalorder %s2087_s24, %s2435_s2 }
   0xb   : > { %p2225_p6 = pnand %p2217_p4, %p2002_p5 }
   0xd   : > { %p2089_p8 = pneg %p2225_p6 }
   0xf   : > { %p2090_p9 = pnand %p2089_p8, %p2088_p7 }
  0x11   : > { %p2091_p10 = pneg %p2090_p9 }
  0x13   : > { %p2096_p12 = pnand %p2094_p11, %p2091_p10 }
  0x15   : > { %2099 = shalt.err (!%p2096_p12)
}
  0x16   : > { %s2100_s29 = scalar_lea.vmem %s162_s20, 1536  ;;  %p2108_p2 = scmp.lt.s32.totalorder %s162_s20, %s162_s20 }
  0x17   : > { %p2101_p13 = scmp.ne.s32.totalorder %s162_s20, %s2100_s29  ;;  %p2109_p5 = scmp.lt.s32.totalorder %s2100_s29, %s2100_s29 }
  0x19   : > { %p2103_p0 = pnand %p2101_p13, %p2089_p8  ;;  %p2110_p4 = por %p2109_p5, %p2108_p2 }
  0x1b   : > { %p2104_p1 = pneg %p2103_p0 }
  0x1d   : > { %p2111_p3 = pnand %p2110_p4, %p2104_p1 }
  0x1f   : > { %2114 = shalt.err (!%p2111_p3)
}
  0x20   : > { %s2144_s30 = smov 128   ;;  %s2145_s4 = smov 8  }
  0x21   : > { %2005 = dma.hbm_to_vmem [thread:$0]  (!%p2225_p6), %s2435_s2, 1536, %s162_s20, [#allocation3], %s2144_s30, %s2144_s30, %s2145_s4  }
  0x22   : > { %p2443_p7 = scmp.ne.s32.totalorder %s2440_s17, 0 }
  0x23   : > { %p2444_p9 = scmp.ne.s32.totalorder (!%p2443_p7), %s2441_s18, 0 }
  0x24   : > { %184 = sbr.rel (%p2443_p7) target bundleno = 477 (0x1dd), region = 32 }
  0x2b   : > { %2128 = dma.done.wait (%p2444_p9), [#allocation3], 1536  }
  0x2c   : > { %2130 = vsyncadd (%p2444_p9), [#allocation3], 4294965760  ;;  %p216_p3 = scmp.lt.s32.totalorder %s2133_s12, 1  ;;  %v996_v0 = vlaneseq  ;;  %v2146_v1 = vmov 1983009808   ;;  %s2147_s11 = smov 118  }
  0x2d   : > { %v994_v2 = vunpack.c.l.s4 %v2146_v1  ;;  %v2063_v7 = vld [vmem:[%s2434_s1 + $0x8] sm:$0xff]   ;;  %v2064_v8 = vld [vmem:[%s2434_s1] sm:$0xff]   ;;  %s2148_s20 = smov 120   ;;  %s2149_s21 = smov 125   ;;  %v2170_v32 = vmov 0   ;;  %v481_v36 = vld [vmem:[#allocation2 + $0x18] sm:$0xff] }
  0x2e   : > { %s2450_s12 = smov (!%p216_p3, %s2133_s12), 1  ;;  %v997_v3 = vshrl.u32 %v996_v0, 7  ;;  %404 = vrot.lane.b32.xlu1 %v2063_v7, %s2148_s20  ;;  %v2065_v11 = vld [vmem:[%s2434_s1] sm:$0xff]   ;;  %s2150_s24 = smov 119   ;;  %v2066_v12 = vld [vmem:[%s2434_s1 + $0x8] sm:$0xff]   ;;  %2061 = vset.pattern.permute.xlu0 %v2170_v32  ;;  %v480_v37 = vld [vmem:[#allocation2 + $0x10] sm:$0xff] }
  0x2f   : > { %v995_v4 = vunpack.c.0.s8 %v994_v2  ;;  %s1731_s7 = sshll.u32 %s2450_s12, 1  ;;  %s2151_s27 = smov 92   ;;  %v2281_v13 = vld [vmem:[%s2434_s1] sm:$0xff]   ;;  %v2286_v14 = vld [vmem:[%s2434_s1 + $0x8] sm:$0xff]   ;;  %2062 = vset.pattern.permute.xlu1 %v2170_v32  ;;  %v932_v40 = vld [vmem:[#allocation2 + $0x38] sm:$0xff]  ;;  %vm274_vm0 = vcmask 1041408  }
  0x30   : > { %s219_s10 = scalar_lea.vmem %s2433_s0, %s1731_s7  ;;  %s2152_s5 = smov 124   ;;  %v2069_v15 = vld [vmem:[%s2434_s1] sm:$0xff]   ;;  %v2071_v16 = vld [vmem:[%s2434_s1 + $0x8] sm:$0xff]   ;;  %v931_v41 = vld [vmem:[#allocation2 + $0x30] sm:$0xff]  ;;  %vm267_vm1 = vcmask 31744   ;;  %vm1608_vm5 = vcmask 523264  }
  0x31   : > { %v998_v5 = vsub.s32 %v995_v4, %v997_v3  ;;  %v2259_v6 = vld.sshfl [vmem:[%s219_s10] sm:$0x3 pattern:$0x76325410]  ;;  %s2153_s6 = smov 96   ;;  %s2154_s7 = smov 121  }
  0x32   : > { %414 = vrot.lane.b32.xlu0 %v2259_v6, %s2147_s11  ;;  %v2268_v9 = vld [vmem:[%s219_s10] sm:$0x3]  ;;  %s2155_s10 = smov 122   ;;  %s2156_s17 = smov 112   ;;  %v2072_v18 = vld [vmem:[%s2434_s1 + $0x8] sm:$0xff]   ;;  %v1567_v44 = vld [vmem:[#allocation2 + $0x58] sm:$0xff] }
  0x33   : > { %v999_v10 = vrot.slane %v2268_v9, %v998_v5  ;;  %v2070_v17 = vld [vmem:[%s2434_s1] sm:$0xff]   ;;  %s2157_s22 = smov 88   ;;  %s2158_s23 = smov 123   ;;  %v2074_v20 = vld [vmem:[%s2434_s1 + $0x8] sm:$0xff]   ;;  %v1566_v45 = vld [vmem:[#allocation2 + $0x50] sm:$0xff]  ;;  %v1071_v56 = vsel %vm274_vm0, %v2268_v9, 0 }
  0x34   : > { %v2073_v19 = vld [vmem:[%s2434_s1] sm:$0xff]   ;;  %s2160_s29 = smov 84   ;;  %v2076_v22 = vld [vmem:[%s2434_s1 + $0x8] sm:$0xff]   ;;  %s2162_s15 = smov 80  }
  0x35   : > { %1000 = vrot.lane.b32.xlu1 %v999_v10, %s2149_s21  ;;  %v2075_v21 = vld [vmem:[%s2434_s1] sm:$0xff]   ;;  %v2078_v24 = vld [vmem:[%s2434_s1 + $0x8] sm:$0xff]   ;;  %s2166_s28 = smov 76   ;;  %s2169_s8 = smov 100  }
  0x36   : > { %402 = vrot.lane.b32.xlu0 %v2064_v8, %s2148_s20  ;;  %v2077_v23 = vld [vmem:[%s2434_s1] sm:$0xff]   ;;  %v2080_v26 = vld [vmem:[%s2434_s1 + $0x8] sm:$0xff]   ;;  %s1799_s18 = sshll.u32 %s2450_s12, 5 }
  0x37   : > { %v2079_v25 = vld [vmem:[%s2434_s1] sm:$0xff]   ;;  %v2082_v28 = vld [vmem:[%s2434_s1 + $0x8] sm:$0xff]  }
  0x38   : > { %v2081_v27 = vld [vmem:[%s2434_s1] sm:$0xff]   ;;  %v2084_v30 = vld [vmem:[%s2434_s1 + $0x8] sm:$0xff]  }
  0x39   : > { %988 = vrot.lane.b32.xlu1 %v2065_v11, %s2151_s27  ;;  %v2083_v29 = vld [vmem:[%s2434_s1] sm:$0xff]   ;;  %v2086_v33 = vld [vmem:[%s2434_s1 + $0x8] sm:$0xff]  }
  0x3a   : > { %265 = vrot.lane.b32.xlu0 %v2259_v6, %s2150_s24  ;;  %s2159_s24 = smov 116   ;;  %v2085_v31 = vld [vmem:[%s2434_s1] sm:$0xff]   ;;  %v479_v35 = vld [vmem:[#allocation2 + $0x8] sm:$0xff] }
  0x3b   : > { %v478_v34 = vld [vmem:[#allocation2] sm:$0xff]  ;;  %v930_v38 = vld [vmem:[#allocation2 + $0x28] sm:$0xff] }
  0x3c   : > { %v929_v39 = vld [vmem:[#allocation2 + $0x20] sm:$0xff]  ;;  %v1565_v42 = vld [vmem:[#allocation2 + $0x48] sm:$0xff] }
  0x3d   : > { %253 = vrot.lane.b32.xlu1 %v2281_v13, %s2152_s5  ;;  %v1564_v43 = vld [vmem:[#allocation2 + $0x40] sm:$0xff] }
  0x3e   : > { %990 = vrot.lane.b32.xlu0 %v2066_v12, %s2151_s27 }
  0x41   : > { %327 = vrot.lane.b32.xlu1 %v2259_v6, %s2148_s20  ;;  %s2164_s20 = smov 113  }
  0x42   : > { %255 = vrot.lane.b32.xlu0 %v2286_v14, %s2152_s5  ;;  %s2168_s5 = smov 110  }
  0x45   : > { %1062 = vrot.lane.b32.xlu1 %v2066_v12, %s2153_s6 }
  0x46   : > { %1060 = vrot.lane.b32.xlu0 %v2065_v11, %s2153_s6 }
  0x49   : > { %1149 = vrot.lane.b32.xlu1 %v2259_v6, %s2155_s10 }
  0x4a   : > { %545 = vrot.lane.b32.xlu0 %v2259_v6, %s2154_s7  ;;  %s2161_s7 = smov 108  }
  0x4d   : > { %535 = vrot.lane.b32.xlu1 %v2071_v16, %s2156_s17 }
  0x4e   : > { %533 = vrot.lane.b32.xlu0 %v2069_v15, %s2156_s17  ;;  %s2163_s17 = smov 117  }
  0x51   : > { %1139 = vrot.lane.b32.xlu1 %v2072_v18, %s2157_s22 }
  0x52   : > { %1137 = vrot.lane.b32.xlu0 %v2070_v17, %s2157_s22 }
  0x55   : > { %605 = vrot.lane.b32.xlu1 %v2069_v15, %s2159_s24 }
  0x56   : > { %609 = vrot.lane.b32.xlu0 %v2259_v6, %s2158_s23  ;;  %s2165_s23 = smov 104  }
  0x59   : > { %1227 = vrot.lane.b32.xlu1 %v2073_v19, %s2160_s29 }
  0x5a   : > { %607 = vrot.lane.b32.xlu0 %v2071_v16, %s2159_s24 }
  0x5d   : > { %1317 = vrot.lane.b32.xlu1 %v2259_v6, %s2159_s24 }
  0x5e   : > { %1229 = vrot.lane.b32.xlu0 %v2074_v20, %s2160_s29  ;;  %s2167_s29 = smov 115  }
  0x61   : > { %685 = vrot.lane.b32.xlu1 %v2076_v22, %s2161_s7 }
  0x62   : > { %683 = vrot.lane.b32.xlu0 %v2075_v21, %s2161_s7 }
  0x65   : > { %1307 = vrot.lane.b32.xlu1 %v2078_v24, %s2162_s15 }
  0x66   : > { %1305 = vrot.lane.b32.xlu0 %v2077_v23, %s2162_s15 }
  0x69   : > { %1408 = vrot.lane.b32.xlu1 %v2259_v6, %s2164_s20  ;;  %s235_s20 = scalar_lea.vmem %s2436_s3, %s1799_s18 }
  0x6a   : > { %773 = vrot.lane.b32.xlu0 %v2259_v6, %s2163_s17  ;;  %s2171_s17 = smov 72  }
  0x6d   : > { %763 = vrot.lane.b32.xlu1 %v2080_v26, %s2165_s23 }
  0x6e   : > { %761 = vrot.lane.b32.xlu0 %v2079_v25, %s2165_s23 }
  0x71   : > { %1398 = vrot.lane.b32.xlu1 %v2082_v28, %s2166_s28 }
  0x72   : > { %1396 = vrot.lane.b32.xlu0 %v2081_v27, %s2166_s28 }
  0x75   : > { %1499 = vrot.lane.b32.xlu1 %v2259_v6, %s2168_s5 }
  0x76   : > { %864 = vrot.lane.b32.xlu0 %v2259_v6, %s2167_s29 }
  0x79   : > { %854 = vrot.lane.b32.xlu1 %v2084_v30, %s2169_s8 }
  0x7a   : > { %852 = vrot.lane.b32.xlu0 %v2083_v29, %s2169_s8 }
  0x7d   : > { %1489 = vrot.lane.b32.xlu1 %v2086_v33, %s2171_s17 }
  0x7e   : > { %1487 = vrot.lane.b32.xlu0 %v2085_v31, %s2171_s17 }
  0x81   : > { %489 = vperm.xlu1 %2062, %v479_v35  }
  0x82   : > { %484 = vperm.xlu0 %2061, %v478_v34  }
  0x85   : > { %494 = vperm.xlu1 %2062, %v480_v37  }
  0x86   : > { %499 = vperm.xlu0 %2061, %v481_v36  }
  0x89   : > { %935 = vperm.xlu1 %2062, %v929_v39  }
  0x8a   : > { %940 = vperm.xlu0 %2061, %v930_v38  }
  0x8d   : > { %945 = vperm.xlu1 %2062, %v931_v41  }
  0x8e   : > { %950 = vperm.xlu0 %2061, %v932_v40  }
  0x91   : > { %1570 = vperm.xlu1 %2062, %v1564_v43  }
  0x92   : > { %1575 = vperm.xlu0 %2061, %v1565_v42  }
  0x95   : > { %1580 = vperm.xlu1 %2062, %v1566_v45  }
  0x96   : > { %1585 = vperm.xlu0 %2061, %v1567_v44  }
  0xa0   : > { %v405_v48 = vpop.permute.xlu1 %404 }
  0xa4   : > { %v415_v46 = vpop.permute.xlu0 %414 }
  0xa5   : > { %1985 = vmatprep.subr.msk.bf16.mxu0 %vm274_vm0, %v415_v46  ;;  %v423_v47 = vsel %vm274_vm0, %v415_v46, 0 }
  0xa6   : > { %1858 = vmatpush3.bf16.msra.mxu0 %v423_v47 }
  0xa7   : > { %v1001_v50 = vpop.permute.xlu1 %1000 }
  0xa8   : > { %v403_v49 = vpop.permute.xlu0 %402  ;;  %v1009_v51 = vsel %vm274_vm0, %v1001_v50, 0  ;;  %1991 = vmatprep.subr.msk.bf16.mxu0 %vm274_vm0, %v1001_v50 }
  0xa9   : > { %1859 = vmatprep.mubr.msk.bf16.mxu0 %vm267_vm1, %v403_v49 }
  0xaa   : > { %1860 = vmatmul.mubr.msk.bf16.vlgmr.msra.gmra.mrb[0].mxu0 %vm267_vm1, %v405_v48 }
  0xab   : > { %1894 = vmatpush3.bf16.msra.mxu0 %v1009_v51  ;;  %v989_v54 = vpop.permute.xlu1 %988 }
  0xac   : > { %v266_v52 = vpop.permute.xlu0 %265  ;;  %1992 = vmatprep.subr.msk.bf16.mxu0 %vm274_vm0, %v2268_v9  ;;  %1895 = vmatprep.mubr.msk.bf16.mxu0 %vm267_vm1, %v989_v54 }
  0xad   : > { %1983 = vmatprep.subr.msk.bf16.mxu1 %vm274_vm0, %v266_v52  ;;  %v276_v53 = vsel %vm274_vm0, %v266_v52, 0 }
  0xae   : > { %1846 = vmatpush3.bf16.msra.mxu1 %v276_v53 }
  0xaf   : > { %v254_v57 = vpop.permute.xlu1 %253 }
  0xb0   : > { %v991_v55 = vpop.permute.xlu0 %990  ;;  %1847 = vmatprep.mubr.msk.bf16.mxu1 %vm267_vm1, %v254_v57 }
  0xb2   : > { %1896 = vmatmul.mubr.msk.bf16.vlgmr.msra.gmra.mrb[4].mxu0 %vm267_vm1, %v991_v55 }
  0xb3   : > { %1900 = vmatpush3.bf16.msra.mxu0 %v1071_v56  ;;  %v328_v59 = vpop.permute.xlu1 %327 }
  0xb4   : > { %v256_v58 = vpop.permute.xlu0 %255  ;;  %v336_v60 = vsel %vm274_vm0, %v328_v59, 0  ;;  %1984 = vmatprep.subr.msk.bf16.mxu1 %vm274_vm0, %v328_v59 }
  0xb5   : > { %1848 = vmatmul.mubr.msk.bf16.vlgmr.msra.gmra.mrb[0].mxu1 %vm267_vm1, %v256_v58 }
  0xb6   : > { %1853 = vmatprep.mubr.msk.bf16.mxu1 %vm267_vm1, %v2281_v13  ;;  %1852 = vmatpush3.bf16.msra.mxu1 %v336_v60 }
  0xb7   : > { %v1063_v62 = vpop.permute.xlu1 %1062 }
  0xb8   : > { %v1061_v61 = vpop.permute.xlu0 %1060 }
  0xb9   : > { %1901 = vmatprep.mubr.msk.bf16.mxu0 %vm267_vm1, %v1061_v61 }
  0xbb   : > { %v1150_v0 = vpop.permute.xlu1 %1149 }
  0xbc   : > { %v546_v63 = vpop.permute.xlu0 %545  ;;  %v1158_v2 = vsel %vm274_vm0, %v1150_v0, 0  ;;  %1993 = vmatprep.subr.msk.bf16.mxu0 %vm274_vm0, %v1150_v0 }
  0xbd   : > { %1986 = vmatprep.subr.msk.bf16.mxu1 %vm274_vm0, %v546_v63  ;;  %v554_v1 = vsel %vm274_vm0, %v546_v63, 0 }
  0xbe   : > { %1902 = vmatmul.mubr.msk.bf16.vlgmr.msra.gmra.mrb[4].mxu0 %vm267_vm1, %v1063_v62 }
  0xbf   : > { %1906 = vmatpush3.bf16.msra.mxu0 %v1158_v2  ;;  %v536_v4 = vpop.permute.xlu1 %535 }
  0xc0   : > { %v534_v3 = vpop.permute.xlu0 %533  ;;  %1994 = vmatprep.subr.msk.bf16.mxu0 %vm274_vm0, %v266_v52 }
  0xc1   : > { %1854 = vmatmul.mubr.msk.bf16.vlgmr.msra.gmra.mrb[0].mxu1 %vm267_vm1, %v2286_v14 }
  0xc2   : > { %1864 = vmatpush3.bf16.msra.mxu1 %v554_v1  ;;  %1865 = vmatprep.mubr.msk.bf16.mxu1 %vm267_vm1, %v534_v3 }
  0xc3   : > { %v1140_v6 = vpop.permute.xlu1 %1139 }
  0xc4   : > { %v1138_v5 = vpop.permute.xlu0 %1137 }
  0xc5   : > { %1907 = vmatprep.mubr.msk.bf16.mxu0 %vm267_vm1, %v1138_v5 }
  0xc7   : > { %v606_v9 = vpop.permute.xlu1 %605 }
  0xc8   : > { %v610_v7 = vpop.permute.xlu0 %609 }
  0xc9   : > { %v618_v8 = vsel %vm274_vm0, %v610_v7, 0  ;;  %1866 = vmatmul.mubr.msk.bf16.vlgmr.msra.gmra.mrb[4].mxu1 %vm267_vm1, %v536_v4  ;;  %1987 = vmatprep.subr.msk.bf16.mxu1 %vm274_vm0, %v610_v7 }
  0xca   : > { %1870 = vmatpush3.bf16.msra.mxu1 %v618_v8  ;;  %1908 = vmatmul.mubr.msk.bf16.vlgmr.msra.gmra.mrb[4].mxu0 %vm267_vm1, %v1140_v6 }
  0xcb   : > { %1912 = vmatpush3.bf16.msra.mxu0 %v276_v53  ;;  %1988 = vmatprep.subr.msk.bf16.mxu1 %vm274_vm0, %v266_v52  ;;  %v1228_v11 = vpop.permute.xlu1 %1227 }
  0xcc   : > { %v608_v10 = vpop.permute.xlu0 %607  ;;  %1871 = vmatprep.mubr.msk.bf16.mxu1 %vm267_vm1, %v606_v9  ;;  %1913 = vmatprep.mubr.msk.bf16.mxu0 %vm267_vm1, %v1228_v11 }
  0xcf   : > { %v1318_v13 = vpop.permute.xlu1 %1317 }
  0xd0   : > { %v1230_v12 = vpop.permute.xlu0 %1229  ;;  %1995 = vmatprep.subr.msk.bf16.mxu0 %vm274_vm0, %v1318_v13  ;;  %v1326_v14 = vsel %vm274_vm0, %v1318_v13, 0 }
  0xd3   : > { %v686_v16 = vpop.permute.xlu1 %685 }
  0xd4   : > { %v684_v15 = vpop.permute.xlu0 %683 }
  0xd5   : > { %1872 = vmatmul.mubr.msk.bf16.vlgmr.msra.gmra.mrb[4].mxu1 %vm267_vm1, %v608_v10 }
  0xd6   : > { %1876 = vmatpush3.bf16.msra.mxu1 %v276_v53  ;;  %1914 = vmatmul.mubr.msk.bf16.vlgmr.msra.gmra.mrb[4].mxu0 %vm267_vm1, %v1230_v12 }
  0xd7   : > { %1918 = vmatpush3.bf16.msra.mxu0 %v1326_v14  ;;  %1877 = vmatprep.mubr.msk.bf16.mxu1 %vm267_vm1, %v684_v15  ;;  %v1308_v18 = vpop.permute.xlu1 %1307 }
  0xd8   : > { %v1306_v17 = vpop.permute.xlu0 %1305 }
  0xd9   : > { %1919 = vmatprep.mubr.msk.bf16.mxu0 %vm267_vm1, %v1306_v17 }
  0xdb   : > { %v1409_v20 = vpop.permute.xlu1 %1408 }
  0xdc   : > { %v774_v19 = vpop.permute.xlu0 %773  ;;  %1996 = vmatprep.subr.msk.bf16.mxu0 %vm274_vm0, %v1409_v20  ;;  %v1417_v22 = vsel %vm274_vm0, %v1409_v20, 0 }
  0xdd   : > { %1989 = vmatprep.subr.msk.bf16.mxu1 %vm274_vm0, %v774_v19  ;;  %v782_v21 = vsel %vm274_vm0, %v774_v19, 0 }
  0xdf   : > { %v764_v24 = vpop.permute.xlu1 %763 }
  0xe0   : > { %v762_v23 = vpop.permute.xlu0 %761 }
  0xe1   : > { %1878 = vmatmul.mubr.msk.bf16.vlgmr.msra.gmra.mrb[4].mxu1 %vm267_vm1, %v686_v16 }
  0xe2   : > { %1920 = vmatmul.mubr.msk.bf16.vlgmr.msra.gmra.mrb[4].mxu0 %vm267_vm1, %v1308_v18  ;;  %1882 = vmatpush3.bf16.msra.mxu1 %v782_v21 }
  0xe3   : > { %1924 = vmatpush3.bf16.msra.mxu0 %v1417_v22  ;;  %1883 = vmatprep.mubr.msk.bf16.mxu1 %vm267_vm1, %v762_v23  ;;  %v1399_v26 = vpop.permute.xlu1 %1398 }
  0xe4   : > { %v1397_v25 = vpop.permute.xlu0 %1396 }
  0xe5   : > { %1925 = vmatprep.mubr.msk.bf16.mxu0 %vm267_vm1, %v1397_v25 }
  0xe7   : > { %v1500_v28 = vpop.permute.xlu1 %1499 }
  0xe8   : > { %v865_v27 = vpop.permute.xlu0 %864  ;;  %1997 = vmatprep.subr.msk.bf16.mxu0 %vm274_vm0, %v1500_v28  ;;  %v1508_v30 = vsel %vm274_vm0, %v1500_v28, 0 }
  0xe9   : > { %1990 = vmatprep.subr.msk.bf16.mxu1 %vm274_vm0, %v865_v27  ;;  %v873_v29 = vsel %vm274_vm0, %v865_v27, 0 }
  0xeb   : > { %v855_v33 = vpop.permute.xlu1 %854 }
  0xec   : > { %v853_v31 = vpop.permute.xlu0 %852 }
  0xed   : > { %1884 = vmatmul.mubr.msk.bf16.vlgmr.msra.gmra.mrb[4].mxu1 %vm267_vm1, %v764_v24 }
  0xee   : > { %1926 = vmatmul.mubr.msk.bf16.vlgmr.msra.gmra.mrb[4].mxu0 %vm267_vm1, %v1399_v26  ;;  %1888 = vmatpush3.bf16.msra.mxu1 %v873_v29 }
  0xef   : > { %1930 = vmatpush3.bf16.msra.mxu0 %v1508_v30  ;;  %1889 = vmatprep.mubr.msk.bf16.mxu1 %vm267_vm1, %v853_v31  ;;  %v1490_v34 = vpop.permute.xlu1 %1489 }
  0xf0   : > { %v1488_v32 = vpop.permute.xlu0 %1487 }
  0xf1   : > { %1931 = vmatprep.mubr.msk.bf16.mxu0 %vm267_vm1, %v1488_v32 }
  0xf9   : > { %1890 = vmatmul.mubr.msk.bf16.vlgmr.msra.gmra.mrb[4].mxu1 %vm267_vm1, %v855_v33 }
  0xfa   : > { %1932 = vmatmul.mubr.msk.bf16.vlgmr.msra.gmra.mrb[4].mxu0 %vm267_vm1, %v1490_v34 }
 0x100   : > { %v490_v47 = vpop.permute.xlu1 %489 }
 0x101   : > { %v485_v48 = vpop.permute.xlu0 %484 }
 0x104   : > { %v495_v49 = vpop.permute.xlu1 %494 }
 0x105   : > { %v500_v51 = vpop.permute.xlu0 %499 }
 0x108   : > { %v936_v50 = vpop.permute.xlu1 %935 }
 0x109   : > { %v941_v52 = vpop.permute.xlu0 %940 }
 0x10c   : > { %v946_v53 = vpop.permute.xlu1 %945 }
 0x10d   : > { %v951_v55 = vpop.permute.xlu0 %950 }
 0x110   : > { %v1571_v58 = vpop.permute.xlu1 %1570 }
 0x111   : > { %v1576_v63 = vpop.permute.xlu0 %1575 }
 0x114   : > { %v1581_v0 = vpop.permute.xlu1 %1580 }
 0x115   : > { %v1586_v23 = vpop.permute.xlu0 %1585 }
 0x17d   : > { %v1861_v35 = vpop.f32.mrb[0].mxu0 }
 0x17e   : > { %v459_v36 = vpop.f32.mrb[1].mxu0 }
 0x17f   : > { %v1862_v37 = vpop.f32.mrb[2].mxu0 }
 0x180   : > { %v462_v38 = vpop.f32.mrb[3].mxu0 }
 0x194   : > { %v1855_v39 = vpop.f32.mrb[0].mxu1 }
 0x195   : > { %v1935_v40 = vadd.f32 %v1861_v35, %v1855_v39  ;;  %v372_v41 = vpop.f32.mrb[1].mxu1 }
 0x196   : > { %v1936_v42 = vadd.f32 %v459_v36, %v372_v41  ;;  %v1856_v43 = vpop.f32.mrb[2].mxu1 }
 0x197   : > { %v1937_v44 = vadd.f32 %v1862_v37, %v1856_v43  ;;  %v375_v45 = vpop.f32.mrb[3].mxu1  ;;  %v504_v54 = vadd.f32 %v1935_v40, %v495_v49 }
 0x198   : > { %v1938_v46 = vadd.f32 %v462_v38, %v375_v45  ;;  %v502_v56 = vadd.f32 %v1936_v42, %v485_v48 }
 0x199   : > { %v505_v57 = vadd.f32 %v1937_v44, %v500_v51  ;;  %v512_v59 = vmul.f32 0.2, %v504_v54  ;;  %vm508_vm2 = vcmp.ge.f32.partialorder %v504_v54, 0.0 }
 0x19a   : > { %v503_v60 = vadd.f32 %v1938_v46, %v490_v47  ;;  %v510_v61 = vmul.f32 0.2, %v502_v56  ;;  %vm506_vm3 = vcmp.ge.f32.partialorder %v502_v56, 0.0 }
 0x19b   : > { %v513_v62 = vmul.f32 0.2, %v505_v57  ;;  %vm509_vm4 = vcmp.ge.f32.partialorder %v505_v57, 0.0  ;;  %v516_v2 = vsel %vm508_vm2, %v504_v54, %v512_v59 }
 0x19c   : > { %vm507_vm6 = vcmp.ge.f32.partialorder %v503_v60, 0.0  ;;  %v511_v3 = vmul.f32 0.2, %v503_v60  ;;  %v514_v8 = vsel %vm506_vm3, %v502_v56, %v510_v61 }
 0x19d   : > { %v517_v7 = vsel %vm509_vm4, %v505_v57, %v513_v62 }
 0x19e   : > { %v515_v40 = vsel %vm507_vm6, %v503_v60, %v511_v3 }
 0x1cc   : > { %v1891_v1 = vpop.f32.mrb[4].mxu1 }
 0x1cd   : > { %v955_v4 = vadd.f32 %v1891_v1, %v946_v53  ;;  %v909_v5 = vpop.f32.mrb[5].mxu1  ;;  %v1933_v6 = vpop.f32.mrb[4].mxu0 }
 0x1ce   : > { %v953_v9 = vadd.f32 %v936_v50, %v909_v5  ;;  %v1590_v10 = vadd.f32 %v1933_v6, %v1581_v0  ;;  %v1892_v11 = vpop.f32.mrb[6].mxu1  ;;  %v1544_v12 = vpop.f32.mrb[5].mxu0 }
 0x1cf   : > { %vm959_vm7 = vcmp.ge.f32.partialorder %v955_v4, 0.0  ;;  %v963_v13 = vmul.f32 0.2, %v955_v4  ;;  %v956_v14 = vadd.f32 %v1892_v11, %v951_v55  ;;  %v1588_v15 = vadd.f32 %v1571_v58, %v1544_v12  ;;  %v912_v16 = vpop.f32.mrb[7].mxu1  ;;  %v1934_v17 = vpop.f32.mrb[6].mxu0 }
 0x1d0   : > { %vm957_vm8 = vcmp.ge.f32.partialorder %v953_v9, 0.0  ;;  %v961_v18 = vmul.f32 0.2, %v953_v9  ;;  %vm1594_vm9 = vcmp.ge.f32.partialorder %v1590_v10, 0.0  ;;  %v1598_v19 = vmul.f32 0.2, %v1590_v10 }
 0x1d1   : > { %v967_v20 = vsel %vm959_vm7, %v955_v4, %v963_v13  ;;  %vm960_vm10 = vcmp.ge.f32.partialorder %v956_v14, 0.0  ;;  %v964_v21 = vmul.f32 0.2, %v956_v14  ;;  %vm1592_vm11 = vcmp.ge.f32.partialorder %v1588_v15, 0.0  ;;  %v1547_v22 = vpop.f32.mrb[7].mxu0 }
 0x1d2   : > { %v971_v24 = vadd.f32 %v967_v20, %v516_v2  ;;  %v965_v25 = vsel %vm957_vm8, %v953_v9, %v961_v18  ;;  %v1602_v26 = vsel %vm1594_vm9, %v1590_v10, %v1598_v19  ;;  %v1596_v27 = vmul.f32 0.2, %v1588_v15 }
 0x1d3   : > { %v969_v28 = vadd.f32 %v965_v25, %v514_v8  ;;  %v968_v29 = vsel %vm960_vm10, %v956_v14, %v964_v21  ;;  %v954_v30 = vadd.f32 %v941_v52, %v912_v16  ;;  %v1591_v31 = vadd.f32 %v1934_v17, %v1586_v23 }
 0x1d4   : > { %v1606_v32 = vadd.f32 %v1602_v26, %v971_v24  ;;  %v972_v33 = vadd.f32 %v968_v29, %v517_v7  ;;  %v1600_v34 = vsel %vm1592_vm11, %v1588_v15, %v1596_v27  ;;  %v1589_v35 = vadd.f32 %v1576_v63, %v1547_v22 }
 0x1d5   : > { %v1604_v36 = vadd.f32 %v1600_v34, %v969_v28  ;;  %vm958_vm12 = vcmp.ge.f32.partialorder %v954_v30, 0.0  ;;  %v962_v37 = vmul.f32 0.2, %v954_v30  ;;  %vm1595_vm13 = vcmp.ge.f32.partialorder %v1591_v31, 0.0 }
 0x1d6   : > { %1611 = vst.msk [vmem:[%s235_s20 + $0x10] sm:$0xff] %vm1608_vm5, %v1606_v32  ;;  %v1599_v38 = vmul.f32 0.2, %v1591_v31  ;;  %vm1593_vm14 = vcmp.ge.f32.partialorder %v1589_v35, 0.0  ;;  %v1597_v39 = vmul.f32 0.2, %v1589_v35 }
 0x1d7   : > { %1609 = vst.msk [vmem:[%s235_s20] sm:$0xff] %vm1608_vm5, %v1604_v36  ;;  %v966_v41 = vsel %vm958_vm12, %v954_v30, %v962_v37 }
 0x1d8   : > { %v970_v42 = vadd.f32 %v966_v41, %v515_v40  ;;  %v1603_v43 = vsel %vm1595_vm13, %v1591_v31, %v1599_v38  ;;  %v1601_v44 = vsel %vm1593_vm14, %v1589_v35, %v1597_v39 }
 0x1d9   : > { %v1607_v45 = vadd.f32 %v1603_v43, %v972_v33 }
 0x1da   : > { %v1605_v46 = vadd.f32 %v1601_v44, %v970_v42 }
 0x1db   : > { %1612 = vst.msk [vmem:[%s235_s20 + $0x18] sm:$0xff] %vm1608_vm5, %v1607_v45 }
 0x1dc   : > { %1610 = vst.msk [vmem:[%s235_s20 + $0x8] sm:$0xff] %vm1608_vm5, %v1605_v46 }
 0x1dd PF: > { %s14_s14 = sadd.s32 1, %s2141_s14   ;;  %s2445_s12 = smov %s2137_s13 }
 0x1de   : > { %p11_p4 = scmp.ge.s32.totalorder %s14_s14, 4   ;;  %s2446_s13 = smov %s2448_s16 }
 0x1e0   :  { %13 = sbr.rel (!%p11_p4) target bundleno = 2 (0x2), region = 73 }
 0x1e7   :  { %1643 = vsyncpa [#allocation3], 1 }
 0x1e8   :  { %1645 = vsyncpa [#allocation3 + $0x1], 1 }

// kernel: _lambda_.3
= control target key start
LH: loop header
LB: loop body
LE: loop exit
PB: predicated region body
PF: predicated region fallthrough
CT: control target
= control target key end

     0   :  { %v223_v1 = vmov 0   ;;  %vm101_vm0 = vcmask 785408   ;;  %vm169_vm2 = vcmask 654336   ;;  %s298_s0 = inlined_call_operand.vmem [shape: bf16[96,80], index: 0, kind: input, shape index: {}]   ;;  %s299_s1 = inlined_call_operand.vmem [shape: bf16[32,96], index: 1, kind: input, shape index: {}]   ;;  %s300_s2 = inlined_call_operand.vmem [shape: f32[32,1], index: 2, kind: input, shape index: {}]   ;;  %s301_s3 = inlined_call_operand.vmem [shape: f32[32,80], index: 3, kind: output, shape index: {}]  }
   0x1   :  { %v215_v0 = vld [vmem:[%s298_s0] sm:$0xff]   ;;  %214 = vset.pattern.permute.xlu1 %v223_v1  ;;  %213 = vset.pattern.permute.xlu0 %v223_v1  ;;  %v216_v2 = vld [vmem:[%s298_s0 + $0x8] sm:$0xff]   ;;  %v217_v3 = vld [vmem:[%s298_s0 + $0x10] sm:$0xff]  }
   0x2   :  { %196 = vmatprep.subr.bf16.mxu0 %v215_v0  ;;  %v221_v4 = vld [vmem:[%s299_s1] sm:$0xff]   ;;  %v218_v5 = vld [vmem:[%s298_s0 + $0x18] sm:$0xff]   ;;  %v33_v6 = vld [vmem:[%s300_s2 + $0x10] sm:$0xff] }
   0x3   :  { %197 = vmatpush3.bf16.msra.mxu0 %v215_v0  ;;  %208 = vmatprep.mubr.msk.bf16.mxu0 %vm101_vm0, %v221_v4  ;;  %v31_v7 = vld [vmem:[%s300_s2] sm:$0xff]  ;;  %v34_v8 = vld [vmem:[%s300_s2 + $0x18] sm:$0xff]  ;;  %v32_v9 = vld [vmem:[%s300_s2 + $0x8] sm:$0xff] }
   0x4   :  { %198 = vmatprep.subr.bf16.mxu0 %v216_v2  ;;  %47 = vperm.xlu1 %214, %v33_v6   ;;  %v219_v10 = vld [vmem:[%s298_s0 + $0x20] sm:$0xff]   ;;  %v220_v11 = vld [vmem:[%s298_s0 + $0x28] sm:$0xff]  }
   0x5   :  { %37 = vperm.xlu0 %213, %v31_v7   ;;  %v222_v12 = vld [vmem:[%s299_s1 + $0x8] sm:$0xff]  }
   0x7   :  { %199 = vmatpush3.bf16.msra.mxu0 %v216_v2 }
   0x8   :  { %200 = vmatprep.subr.bf16.mxu0 %v217_v3  ;;  %52 = vperm.xlu1 %214, %v34_v8  }
   0x9   :  { %42 = vperm.xlu0 %213, %v32_v9  }
   0xb   :  { %201 = vmatpush3.bf16.msra.mxu0 %v217_v3 }
   0xc   :  { %202 = vmatprep.subr.bf16.mxu0 %v218_v5 }
   0xf   :  { %203 = vmatpush3.bf16.msra.mxu0 %v218_v5 }
  0x10   :  { %204 = vmatprep.subr.bf16.mxu0 %v219_v10 }
  0x13   :  { %205 = vmatpush3.bf16.msra.mxu0 %v219_v10 }
  0x14   :  { %206 = vmatprep.subr.bf16.mxu0 %v220_v11 }
  0x17   :  { %207 = vmatpush3.bf16.msra.mxu0 %v220_v11 }
  0x1a   :  { %209 = vmatmul.mubr.msk.bf16.vlgmr.msra.gmra.mrb[0].mxu0 %vm101_vm0, %v222_v12 }
  0x83   :  { %v48_v13 = vpop.permute.xlu1 %47 }
  0x84   :  { %v38_v14 = vpop.permute.xlu0 %37 }
  0x87   :  { %v53_v18 = vpop.permute.xlu1 %52 }
  0x88   :  { %v43_v21 = vpop.permute.xlu0 %42 }
  0xed   :  { %v210_v15 = vpop.f32.mrb[0].mxu0 }
  0xee   :  { %v151_v16 = vadd.f32 %v210_v15, %v48_v13  ;;  %v142_v17 = vpop.f32.mrb[1].mxu0 }
  0xef   :  { %v143_v19 = vadd.f32 %v142_v17, %v38_v14  ;;  %v211_v20 = vpop.f32.mrb[2].mxu0 }
  0xf0   :  { %vm159_vm1 = vcmp.ge.f32.partialorder %v151_v16, 0.0  ;;  %v163_v22 = vmul.f32 0.2, %v151_v16  ;;  %v154_v23 = vadd.f32 %v211_v20, %v53_v18  ;;  %v145_v24 = vpop.f32.mrb[3].mxu0 }
  0xf1   :  { %vm157_vm3 = vcmp.ge.f32.partialorder %v143_v19, 0.0  ;;  %v161_v25 = vmul.f32 0.2, %v143_v19  ;;  %v146_v26 = vadd.f32 %v145_v24, %v43_v21 }
  0xf2   :  { %v167_v27 = vsel %vm159_vm1, %v151_v16, %v163_v22  ;;  %vm160_vm4 = vcmp.ge.f32.partialorder %v154_v23, 0.0  ;;  %v164_v28 = vmul.f32 0.2, %v154_v23 }
  0xf3   :  { %172 = vst.msk [vmem:[%s301_s3 + $0x10] sm:$0xff] %vm169_vm2, %v167_v27  ;;  %v165_v29 = vsel %vm157_vm3, %v143_v19, %v161_v25  ;;  %vm158_vm5 = vcmp.ge.f32.partialorder %v146_v26, 0.0  ;;  %v162_v30 = vmul.f32 0.2, %v146_v26 }
  0xf4   :  { %170 = vst.msk [vmem:[%s301_s3] sm:$0xff] %vm169_vm2, %v165_v29  ;;  %v168_v31 = vsel %vm160_vm4, %v154_v23, %v164_v28 }
  0xf5   :  { %173 = vst.msk [vmem:[%s301_s3 + $0x18] sm:$0xff] %vm169_vm2, %v168_v31  ;;  %v166_v32 = vsel %vm158_vm5, %v146_v26, %v162_v30 }
  0xf6   :  { %171 = vst.msk [vmem:[%s301_s3 + $0x8] sm:$0xff] %vm169_vm2, %v166_v32 }

</bundles_post_ra>
